<compile_context>
chip_gen: v7x
topology: tpu7x:2x2x1
jax: 0.10.0
libtpu: 0.0.40
codegen_flags: <defaults>
</compile_context>

<pallas_src>
import functools

import jax
import jax.numpy as jnp
from jax import lax
from jax.experimental import pallas as pl
from jax.experimental.pallas import tpu as pltpu


def _round_up(x, m):
    return (x + m - 1) // m * m


def _face_loss_kernel(b_real, d_real, tile_c, alpha, b_pad,
                      # scalar prefetch (SMEM):
                      tgt_sref,
                      # inputs:
                      feat_ref, tgtvec_ref, w_ref, bias_ref, centers_hbm,
                      # outputs:
                      logits_ref, loss_ref,
                      # scratch:
                      fbf16, fn_sc, gathered, gsem, m_sc, l_sc, t_sc):
    c = pl.program_id(0)
    nc = pl.num_programs(0)

    @pl.when(c == 0)
    def _init():
        m_sc[...] = jnp.full_like(m_sc, -1e30)
        l_sc[...] = jnp.zeros_like(l_sc)
        t_sc[...] = jnp.zeros_like(t_sc)

        # Hoisted out of the class-tile loop: bf16 copy of the features for
        # the MXU, and the L2-normalized features for the CenterLoss epilogue.
        feat = feat_ref[...]                                   # (B_pad, D_pad) f32
        fbf16[...] = feat.astype(jnp.bfloat16)
        ss = jnp.sum(feat * feat, axis=1, keepdims=True)
        # NOTE: all-zero (padded) rows give NaN here (0 * inf), exactly like
        # the PyTorch reference for zero-norm rows; padded rows are masked out
        # in the epilogue before any reduction.
        fn_sc[...] = feat * lax.rsqrt(ss)                      # EUP rsqrt

        # DMA gather of the B target center rows (HBM -> VMEM scratch), driven
        # by the scalar-prefetched targets.  All copies signal ONE semaphore;
        # the accumulated wait happens in the epilogue, so the gather overlaps
        # with the logits matmuls.  Padded batch rows use target 0, which is a
        # valid class index (< C); those rows are masked out later.
        @pl.loop(0, b_pad)
        def _(i):
            pltpu.make_async_copy(
                centers_hbm.at[pl.ds(tgt_sref[i], 1), :],
                gathered.at[pl.ds(i, 1), :],
                gsem).start()

    # ---- logits tile: features @ W_tile (bf16 MXU operands, f32 accumulate).
    # W arrives pre-transposed as (D_pad, tile_c), i.e. canonical (K, N).
    logits = jnp.dot(fbf16[...], w_ref[...],
                     preferred_element_type=jnp.float32)       # (B_pad, tile_c)
    logits = logits + bias_ref[...]
    logits_ref[...] = logits.astype(logits_ref.dtype)          # bf16 writeback

    # ---- online softmax over class tiles.
    # Padded classes carry bias = -1e30 (weight columns are zero), so their
    # exp underflows to exactly 0; no per-element mask needed.
    m_prev = m_sc[...]
    m_new = jnp.maximum(m_prev, jnp.max(logits, axis=1, keepdims=True))
    p = jnp.exp(logits - m_new)
    l_sc[...] = jnp.exp(m_prev - m_new) * l_sc[...] + jnp.sum(
        p, axis=1, keepdims=True)
    m_sc[...] = m_new

    # Target-logit pick (each row's target lives in exactly one class tile).
    col = c * tile_c + lax.broadcasted_iota(jnp.int32, logits.shape, 1)
    onehot = col == tgtvec_ref[...]                             # (B_pad, tile_c)
    t_sc[...] += jnp.sum(jnp.where(onehot, logits, 0.0), axis=1, keepdims=True)

    @pl.when(c == nc - 1)
    def _finalize():
        # Single accumulated wait for ALL row copies issued at c == 0: the
        # descriptor below is built only for its .wait() -- its dst (`gathered`,
        # the full buffer) sets the expected byte count (= sum of the b_pad
        # per-row copies that signal `gsem`); its src is a dummy ref of
        # matching shape/dtype and is never read.
        pltpu.make_async_copy(fn_sc, gathered, gsem).wait()

        row = lax.broadcasted_iota(jnp.int32, (b_pad, 1), 0)
        row_valid = row < b_real                                # mask padded rows

        # CenterLoss: mean((f / ||f||_2 - centers[targets])^2) over B*D.
        diff = jnp.where(row_valid, fn_sc[...] - gathered[...], 0.0)
        c_loss = jnp.sum(diff * diff) / jnp.float32(b_real * d_real)

        # SoftmaxLoss: mean(logsumexp(logits) - logits[target]).
        lse = m_sc[...] + jnp.log(l_sc[...])
        s_rows = jnp.where(row_valid, lse - t_sc[...], 0.0)
        s_loss = jnp.sum(s_rows) / jnp.float32(b_real)

        loss_ref[0] = c_loss
        loss_ref[1] = s_loss
        loss_ref[2] = s_loss + jnp.float32(alpha) * c_loss


def _vmem_tile_budget_bytes():
    """Generation-safe budget for the pipelined/live VMEM buffers."""
    cap = 64 * 1024 * 1024            # conservative default: v7x per-TC VMEM
    try:
        cap = int(pltpu.get_tpu_info().vmem_capacity_bytes)
    except Exception:
        pass
    # Keep tiles well under physical capacity on every generation (incl. v7x
    # 64 MiB/TC); leave headroom for Mosaic internal scratch.
    return min(cap // 2, 32 * 1024 * 1024)


def face_loss(features, targets, centers, weight, bias, alpha=0.03):
    """features: (B, D) f32, targets: (B,) int, centers: (C, D),
    weight: (C, D) (native nn.Linear layout), bias: (C,)."""
    B, D = features.shape
    C = centers.shape[0]

    LANE, SUB = 128, 8
    b_pad = _round_up(B, SUB)
    d_pad = _round_up(D, LANE)
    c128 = _round_up(C, LANE)

    f32 = jnp.float32
    bf16 = jnp.bfloat16

    # ---- VMEM-budget-driven class tile (bf16 weight + bf16 logits tiles).
    bytes_fixed = (2 * b_pad * d_pad * 4     # features block (double-buffered)
                   + b_pad * d_pad * 2       # bf16 feature scratch
                   + b_pad * d_pad * 4       # normalized-feature scratch
                   + b_pad * d_pad * 4       # gathered target centers
                   + 2 * b_pad * LANE * 4    # targets column block
                   + 8 * b_pad * LANE * 4)   # m/l/t scratch + slack
    per_class = (2 * d_pad * 2               # weight tile (bf16, double-buffered)
                 + 2 * b_pad * 2             # logits tile (bf16, double-buffered)
                 + 2 * SUB * 4)              # bias tile (f32, double-buffered)
    avail = max(_vmem_tile_budget_bytes() - bytes_fixed, LANE * per_class)
    tile_c_cap = max(LANE, min(4096, (avail // per_class) // LANE * LANE))

    # C is padded only to 128; tile_c is the largest lane-aligned divisor of
    # the padded class count <= the VMEM cap, so no dead padded classes are
    # ever streamed through HBM or written back.
    tile_c = LANE
    t = min(tile_c_cap, c128)
    while t >= LANE:
        if c128 % t == 0:
            tile_c = t
            break
        t -= LANE
    c_pad = c128
    n_c = c_pad // tile_c

    def pad2(a, rows, cols):
        a = a.astype(f32)
        if a.shape == (rows, cols):
            return a
        return jnp.pad(a, ((0, rows - a.shape[0]), (0, cols - a.shape[1])))

    feat_p = pad2(features, b_pad, d_pad)                        # f32
    # Weight: pad -> transpose to (D, C) -> bf16, all one-time wrapper work.
    w_p = pad2(weight, c_pad, d_pad).T.astype(bf16)              # (d_pad, c_pad)
    cent_p = pad2(centers, C, d_pad)                             # f32, rows kept
    # Padded classes get bias -1e30 so their logits never survive the softmax
    # (padded weight columns are zero).
    bias_p = jnp.full((1, c_pad), -1e30, f32).at[0, :C].set(bias.astype(f32))
    # Padded batch rows use target 0 -- a valid class index (< C) -- and are
    # masked out of every reduction inside the kernel.
    tgt_p = jnp.pad(targets.astype(jnp.int32), (0, b_pad - B))

    kernel = functools.partial(_face_loss_kernel, B, D, tile_c,
                               float(alpha), b_pad)

    grid_spec = pltpu.PrefetchScalarGridSpec(
        num_scalar_prefetch=1,
        grid=(n_c,),
        in_specs=[
            pl.BlockSpec((b_pad, d_pad), lambda c, tgt: (0, 0)),   # features
            pl.BlockSpec((b_pad, 1), lambda c, tgt: (0, 0)),       # targets vec
            pl.BlockSpec((d_pad, tile_c), lambda c, tgt: (0, c)),  # W tile (K,N)
            pl.BlockSpec((1, tile_c), lambda c, tgt: (0, c)),      # bias tile
            pl.BlockSpec(memory_space=pl.ANY),                     # centers HBM
        ],
        out_specs=(
            pl.BlockSpec((b_pad, tile_c), lambda c, tgt: (0, c)),  # logits tile
            pl.BlockSpec(memory_space=pltpu.MemorySpace.SMEM),     # 3 losses
        ),
        scratch_shapes=[
            pltpu.VMEM((b_pad, d_pad), bf16),    # bf16 features (hoisted cast)
            pltpu.VMEM((b_pad, d_pad), f32),     # L2-normalized features
            pltpu.VMEM((b_pad, d_pad), f32),     # gathered target centers
            pltpu.SemaphoreType.DMA(()),         # single gather semaphore
            pltpu.VMEM((b_pad, 1), f32),         # running max
            pltpu.VMEM((b_pad, 1), f32),         # running sum-exp
            pltpu.VMEM((b_pad, 1), f32),         # target logit
        ],
    )

    logits_p, losses = pl.pallas_call(
        kernel,
        grid_spec=grid_spec,
        out_shape=(
            jax.ShapeDtypeStruct((b_pad, c_pad), bf16),   # bf16 writeback
            jax.ShapeDtypeStruct((3,), f32),
        ),
        compiler_params=pltpu.CompilerParams(
            dimension_semantics=("arbitrary",),          # C axis is a reduction
            vmem_limit_bytes=48 * 1024 * 1024),          # safe on v5e/v6e/v7x
    )(tgt_p, feat_p, tgt_p.reshape(b_pad, 1), w_p, bias_p, cent_p)

    # Logits are computed with bf16 MXU operands and stored in bf16; returned
    # as f32 for caller convenience (bf16-level accuracy).
    return losses[0], losses[1], losses[2], logits_p[:B, :C].astype(f32)


def _reference(features, targets, centers, weight, bias, alpha=0.03):
    # pure-JAX reference matching the PyTorch forward (all f32)
    target_centers = centers[targets]
    norm = jnp.linalg.norm(features, axis=1, keepdims=True)
    fn = features / norm
    c_loss = jnp.mean((fn - target_centers) ** 2)
    logits = features @ weight.T + bias
    logp = jax.nn.log_softmax(logits, axis=1)
    s_loss = -jnp.mean(logp[jnp.arange(features.shape[0]), targets])
    return c_loss, s_loss, s_loss + alpha * c_loss, logits


if __name__ == "__main__":
    B, D, C = 8, 32, 16
    alpha = 0.03

    key = jax.random.PRNGKey(0)
    k_feat, k_tgt, k_cent, k_w, k_b = jax.random.split(key, 5)

    features = jax.random.normal(k_feat, (B, D), jnp.float32)
    targets = jax.random.randint(k_tgt, (B,), 0, C, jnp.int32)
    # Deterministic synthetic parameters (shapes from the module's __init__).
    centers = jax.random.uniform(k_cent, (C, D), jnp.float32)       # ~ torch.rand
    bound = 1.0 / float(D) ** 0.5
    weight = jax.random.uniform(k_w, (C, D), jnp.float32, -bound, bound)
    bias = jax.random.uniform(k_b, (C,), jnp.float32, -bound, bound)

    outs = jax.block_until_ready(
        face_loss(features, targets, centers, weight, bias, alpha))
    c_loss, s_loss, total, logits = outs

    rc, rs, rt, rl = _reference(features, targets, centers, weight, bias, alpha)
    # CenterLoss path is computed fully in f32 -> tight tolerance.
    assert jnp.allclose(c_loss, rc, atol=1e-4, rtol=1e-4), (c_loss, rc)
    # Logits / softmax path uses bf16 MXU operands (f32 accumulation) and a
    # bf16 logits writeback -> compare with loosened tolerance.
    assert jnp.allclose(logits, rl, atol=5e-2, rtol=1e-2), \
        float(jnp.max(jnp.abs(logits - rl)))
    assert jnp.allclose(s_loss, rs, atol=5e-2, rtol=1e-2), (s_loss, rs)
    assert jnp.allclose(total, rt, atol=5e-2, rtol=1e-2), (total, rt)

    print("KERNEL_OK")
</pallas_src>

<mosaic_0001>
module attributes {stable_mosaic.version = 11 : i64} {
  func.func @_face_loss_kernel(%arg0: i32, %arg1: memref<8xi32, #tpu.memory_space<smem>>, %arg2: memref<8x128xf32, #tpu.memory_space<vmem>>, %arg3: memref<8x1xi32, #tpu.memory_space<vmem>>, %arg4: memref<128x128xbf16, #tpu.memory_space<vmem>>, %arg5: memref<1x128xf32, #tpu.memory_space<vmem>>, %arg6: memref<16x128xf32, #tpu.memory_space<any>>, %arg7: memref<8x128xbf16, #tpu.memory_space<vmem>>, %arg8: memref<3xf32, #tpu.memory_space<smem>>, %arg9: memref<8x128xbf16, #tpu.memory_space<vmem>>, %arg10: memref<8x128xf32, #tpu.memory_space<vmem>>, %arg11: memref<8x128xf32, #tpu.memory_space<vmem>>, %arg12: memref<!tpu.dma_semaphore, #tpu.memory_space<semaphore_mem>>, %arg13: memref<8x1xf32, #tpu.memory_space<vmem>>, %arg14: memref<8x1xf32, #tpu.memory_space<vmem>>, %arg15: memref<8x1xf32, #tpu.memory_space<vmem>>) attributes {dimension_semantics = [#tpu.dimension_semantics<arbitrary>], iteration_bounds = array<i64: 1>, scalar_prefetch = 1 : i64, scratch_operands = 7 : i64, tpu.core_type = #tpu.core_type<tc>, window_params = [{pipeline_mode = #tpu.pipeline_mode<synchronous>, transform_indices = @transform_0, window_bounds = array<i64: 8, 128>}, {pipeline_mode = #tpu.pipeline_mode<synchronous>, transform_indices = @transform_1, window_bounds = array<i64: 8, 1>}, {transform_indices = @transform_2, window_bounds = array<i64: 128, 128>}, {transform_indices = @transform_3, window_bounds = array<i64: 1, 128>}, {}, {transform_indices = @transform_5, window_bounds = array<i64: 8, 128>}, {transform_indices = @transform_6, window_bounds = array<i64: 3>}]} {
    %c0_i32 = arith.constant 0 : i32
    %0 = arith.cmpi eq, %arg0, %c0_i32 : i32
    %1 = arith.extui %0 : i1 to i32
    %c0_i32_0 = arith.constant 0 : i32
    %2 = arith.cmpi ne, %1, %c0_i32_0 : i32
    scf.if %2 {
      %cst_28 = arith.constant -1.000000e+30 : f32
      %44 = vector.broadcast %cst_28 : f32 to vector<8x1xf32>
      %c0_29 = arith.constant 0 : index
      %c0_30 = arith.constant 0 : index
      %45 = vector.load %arg13[%c0_29, %c0_30] : memref<8x1xf32, #tpu.memory_space<vmem>>, vector<8x1xf32>
      tpu.vector_store %arg13[%c0_29, %c0_30], %44 {strides = array<i32>} : memref<8x1xf32, #tpu.memory_space<vmem>>, vector<8x1xf32>,
      %cst_31 = arith.constant 0.000000e+00 : f32
      %46 = vector.broadcast %cst_31 : f32 to vector<8x1xf32>
      %c0_32 = arith.constant 0 : index
      %c0_33 = arith.constant 0 : index
      %47 = vector.load %arg14[%c0_32, %c0_33] : memref<8x1xf32, #tpu.memory_space<vmem>>, vector<8x1xf32>
      tpu.vector_store %arg14[%c0_32, %c0_33], %46 {strides = array<i32>} : memref<8x1xf32, #tpu.memory_space<vmem>>, vector<8x1xf32>,
      %cst_34 = arith.constant 0.000000e+00 : f32
      %48 = vector.broadcast %cst_34 : f32 to vector<8x1xf32>
      %c0_35 = arith.constant 0 : index
      %c0_36 = arith.constant 0 : index
      %49 = vector.load %arg15[%c0_35, %c0_36] : memref<8x1xf32, #tpu.memory_space<vmem>>, vector<8x1xf32>
      tpu.vector_store %arg15[%c0_35, %c0_36], %48 {strides = array<i32>} : memref<8x1xf32, #tpu.memory_space<vmem>>, vector<8x1xf32>,
      %c0_37 = arith.constant 0 : index
      %c0_38 = arith.constant 0 : index
      %50 = vector.load %arg2[%c0_37, %c0_38] : memref<8x128xf32, #tpu.memory_space<vmem>>, vector<8x128xf32>
      %51 = arith.truncf %50 : vector<8x128xf32> to vector<8x128xbf16>
      %c0_39 = arith.constant 0 : index
      %c0_40 = arith.constant 0 : index
      %52 = vector.load %arg9[%c0_39, %c0_40] : memref<8x128xbf16, #tpu.memory_space<vmem>>, vector<8x128xbf16>
      tpu.vector_store %arg9[%c0_39, %c0_40], %51 {strides = array<i32>} : memref<8x128xbf16, #tpu.memory_space<vmem>>, vector<8x128xbf16>,
      %53 = arith.mulf %50, %50 : vector<8x128xf32>
      %cst_41 = arith.constant dense<0.000000e+00> : vector<8xf32>
      %54 = vector.multi_reduction <add>, %53, %cst_41 [1] : vector<8x128xf32> to vector<8xf32>
      %55 = vector.shape_cast %54 : vector<8xf32> to vector<8x1xf32>
      %56 = math.rsqrt %55 : vector<8x1xf32>
      %57 = vector.broadcast %56 : vector<8x1xf32> to vector<8x128xf32>
      %58 = arith.mulf %50, %57 : vector<8x128xf32>
      %c0_42 = arith.constant 0 : index
      %c0_43 = arith.constant 0 : index
      %59 = vector.load %arg10[%c0_42, %c0_43] : memref<8x128xf32, #tpu.memory_space<vmem>>, vector<8x128xf32>
      tpu.vector_store %arg10[%c0_42, %c0_43], %58 {strides = array<i32>} : memref<8x128xf32, #tpu.memory_space<vmem>>, vector<8x128xf32>,
      %c0_i32_44 = arith.constant 0 : i32
      %c8_i32 = arith.constant 8 : i32
      %60 = arith.addi %c0_i32_44, %c8_i32 : i32
      %c1_i32 = arith.constant 1 : i32
      scf.for %arg16 = %c0_i32_44 to %60 step %c1_i32  : i32 {
        %c1_i32_46 = arith.constant 1 : i32
        %61 = arith.muli %arg16, %c1_i32_46 : i32
        %c0_i32_47 = arith.constant 0 : i32
        %62 = arith.addi %c0_i32_47, %61 : i32
        %63 = arith.index_cast %62 : i32 to index
        %64 = memref.load %arg1[%63] : memref<8xi32, #tpu.memory_space<smem>>
        %c0_i32_48 = arith.constant 0 : i32
        %65 = tpu.memref_slice %arg6[%64, %c0_i32_48] : memref<16x128xf32, #tpu.memory_space<any>> -> memref<1x128xf32, #tpu.memory_space<any>>
        %c0_i32_49 = arith.constant 0 : i32
        %66 = tpu.memref_slice %arg11[%62, %c0_i32_49] : memref<8x128xf32, #tpu.memory_space<vmem>> -> memref<1x128xf32, #tpu.memory_space<vmem>>
        tpu.enqueue_dma source(%65 : memref<1x128xf32, #tpu.memory_space<any>>) target(%66 : memref<1x128xf32, #tpu.memory_space<vmem>>) target_semaphore(%arg12 : memref<!tpu.dma_semaphore, #tpu.memory_space<semaphore_mem>>)
      }
      %c8_i32_45 = arith.constant 8 : i32
    } else {
    }
    %c0 = arith.constant 0 : index
    %c0_1 = arith.constant 0 : index
    %3 = vector.load %arg9[%c0, %c0_1] : memref<8x128xbf16, #tpu.memory_space<vmem>>, vector<8x128xbf16>
    %c0_2 = arith.constant 0 : index
    %c0_3 = arith.constant 0 : index
    %4 = vector.load %arg4[%c0_2, %c0_3] : memref<128x128xbf16, #tpu.memory_space<vmem>>, vector<128x128xbf16>
    %cst = arith.constant dense<0.000000e+00> : vector<8x128xf32>
    %5 = tpu.matmul %3, %4, %cst {dimension_numbers = #tpu.dot_dimension_numbers<[1], [0], [0], [1], [0, 0, 1, 1], [], []>} : vector<8x128xbf16>, vector<128x128xbf16>, vector<8x128xf32> -> vector<8x128xf32>
    %c0_4 = arith.constant 0 : index
    %c0_5 = arith.constant 0 : index
    %6 = vector.load %arg5[%c0_4, %c0_5] : memref<1x128xf32, #tpu.memory_space<vmem>>, vector<1x128xf32>
    %7 = vector.broadcast %6 : vector<1x128xf32> to vector<8x128xf32>
    %8 = arith.addf %5, %7 : vector<8x128xf32>
    %9 = arith.truncf %8 : vector<8x128xf32> to vector<8x128xbf16>
    %c0_6 = arith.constant 0 : index
    %c0_7 = arith.constant 0 : index
    %10 = vector.load %arg7[%c0_6, %c0_7] : memref<8x128xbf16, #tpu.memory_space<vmem>>, vector<8x128xbf16>
    tpu.vector_store %arg7[%c0_6, %c0_7], %9 {strides = array<i32>} : memref<8x128xbf16, #tpu.memory_space<vmem>>, vector<8x128xbf16>,
    %c0_8 = arith.constant 0 : index
    %c0_9 = arith.constant 0 : index
    %11 = vector.load %arg13[%c0_8, %c0_9] : memref<8x1xf32, #tpu.memory_space<vmem>>, vector<8x1xf32>
    %cst_10 = arith.constant dense<0xFF800000> : vector<8xf32>
    %12 = vector.multi_reduction <maximumf>, %8, %cst_10 [1] : vector<8x128xf32> to vector<8xf32>
    %13 = vector.shape_cast %12 : vector<8xf32> to vector<8x1xf32>
    %14 = arith.maximumf %11, %13 : vector<8x1xf32>
    %15 = vector.broadcast %14 : vector<8x1xf32> to vector<8x128xf32>
    %16 = arith.subf %8, %15 : vector<8x128xf32>
    %17 = math.exp %16 : vector<8x128xf32>
    %18 = arith.subf %11, %14 : vector<8x1xf32>
    %19 = math.exp %18 : vector<8x1xf32>
    %c0_11 = arith.constant 0 : index
    %c0_12 = arith.constant 0 : index
    %20 = vector.load %arg14[%c0_11, %c0_12] : memref<8x1xf32, #tpu.memory_space<vmem>>, vector<8x1xf32>
    %21 = arith.mulf %19, %20 : vector<8x1xf32>
    %cst_13 = arith.constant dense<0.000000e+00> : vector<8xf32>
    %22 = vector.multi_reduction <add>, %17, %cst_13 [1] : vector<8x128xf32> to vector<8xf32>
    %23 = vector.shape_cast %22 : vector<8xf32> to vector<8x1xf32>
    %24 = arith.addf %21, %23 : vector<8x1xf32>
    %c0_14 = arith.constant 0 : index
    %c0_15 = arith.constant 0 : index
    %25 = vector.load %arg14[%c0_14, %c0_15] : memref<8x1xf32, #tpu.memory_space<vmem>>, vector<8x1xf32>
    tpu.vector_store %arg14[%c0_14, %c0_15], %24 {strides = array<i32>} : memref<8x1xf32, #tpu.memory_space<vmem>>, vector<8x1xf32>,
    %c0_16 = arith.constant 0 : index
    %c0_17 = arith.constant 0 : index
    %26 = vector.load %arg13[%c0_16, %c0_17] : memref<8x1xf32, #tpu.memory_space<vmem>>, vector<8x1xf32>
    tpu.vector_store %arg13[%c0_16, %c0_17], %14 {strides = array<i32>} : memref<8x1xf32, #tpu.memory_space<vmem>>, vector<8x1xf32>,
    %c128_i32 = arith.constant 128 : i32
    %27 = arith.muli %arg0, %c128_i32 : i32
    %28 = tpu.iota {dimensions = array<i32: 1>} : vector<8x128xi32>
    %29 = vector.broadcast %27 : i32 to vector<8x128xi32>
    %30 = arith.addi %29, %28 : vector<8x128xi32>
    %c0_18 = arith.constant 0 : index
    %c0_19 = arith.constant 0 : index
    %31 = vector.load %arg3[%c0_18, %c0_19] : memref<8x1xi32, #tpu.memory_space<vmem>>, vector<8x1xi32>
    %32 = vector.broadcast %31 : vector<8x1xi32> to vector<8x128xi32>
    %33 = arith.cmpi eq, %30, %32 : vector<8x128xi32>
    %c0_20 = arith.constant 0 : index
    %c0_21 = arith.constant 0 : index
    %34 = vector.load %arg15[%c0_20, %c0_21] : memref<8x1xf32, #tpu.memory_space<vmem>>, vector<8x1xf32>
    %cst_22 = arith.constant 0.000000e+00 : f32
    %35 = vector.broadcast %cst_22 : f32 to vector<8x128xf32>
    %36 = arith.select %33, %8, %35 : vector<8x128xi1>, vector<8x128xf32>
    %cst_23 = arith.constant dense<0.000000e+00> : vector<8xf32>
    %37 = vector.multi_reduction <add>, %36, %cst_23 [1] : vector<8x128xf32> to vector<8xf32>
    %38 = vector.shape_cast %37 : vector<8xf32> to vector<8x1xf32>
    %39 = arith.addf %34, %38 : vector<8x1xf32>
    %c0_24 = arith.constant 0 : index
    %c0_25 = arith.constant 0 : index
    %40 = vector.load %arg15[%c0_24, %c0_25] : memref<8x1xf32, #tpu.memory_space<vmem>>, vector<8x1xf32>
    tpu.vector_store %arg15[%c0_24, %c0_25], %39 {strides = array<i32>} : memref<8x1xf32, #tpu.memory_space<vmem>>, vector<8x1xf32>,
    %c0_i32_26 = arith.constant 0 : i32
    %41 = arith.cmpi eq, %arg0, %c0_i32_26 : i32
    %42 = arith.extui %41 : i1 to i32
    %c0_i32_27 = arith.constant 0 : i32
    %43 = arith.cmpi ne, %42, %c0_i32_27 : i32
    scf.if %43 {
      tpu.wait_dma2 semaphore(%arg12 : memref<!tpu.dma_semaphore, #tpu.memory_space<semaphore_mem>>) src(%arg10 : memref<8x128xf32, #tpu.memory_space<vmem>>) dst(%arg11 : memref<8x128xf32, #tpu.memory_space<vmem>>)
      %44 = tpu.iota {dimensions = array<i32: 0>} : vector<8x1xi32>
      %c8_i32 = arith.constant 8 : i32
      %45 = vector.broadcast %c8_i32 : i32 to vector<8x1xi32>
      %46 = arith.cmpi slt, %44, %45 : vector<8x1xi32>
      %c0_28 = arith.constant 0 : index
      %c0_29 = arith.constant 0 : index
      %47 = vector.load %arg10[%c0_28, %c0_29] : memref<8x128xf32, #tpu.memory_space<vmem>>, vector<8x128xf32>
      %c0_30 = arith.constant 0 : index
      %c0_31 = arith.constant 0 : index
      %48 = vector.load %arg11[%c0_30, %c0_31] : memref<8x128xf32, #tpu.memory_space<vmem>>, vector<8x128xf32>
      %49 = arith.subf %47, %48 : vector<8x128xf32>
      %cst_32 = arith.constant 0.000000e+00 : f32
      %50 = vector.shape_cast %46 : vector<8x1xi1> to vector<8x1xi1>
      %51 = vector.broadcast %50 : vector<8x1xi1> to vector<8x128xi1>
      %52 = vector.broadcast %cst_32 : f32 to vector<8x128xf32>
      %53 = arith.select %51, %49, %52 : vector<8x128xi1>, vector<8x128xf32>
      %54 = arith.mulf %53, %53 : vector<8x128xf32>
      %55 = vector.shape_cast %54 : vector<8x128xf32> to vector<1x8x128xf32>
      %cst_33 = arith.constant dense<0.000000e+00> : vector<1xf32>
      %56 = vector.multi_reduction <add>, %55, %cst_33 [1, 2] : vector<1x8x128xf32> to vector<1xf32>
      %57 = vector.shape_cast %56 : vector<1xf32> to vector<1x1x1xf32>
      %58 = vector.extract %57[0, 0, 0] : f32 from vector<1x1x1xf32>
      %cst_34 = arith.constant 2.560000e+02 : f32
      %59 = arith.divf %58, %cst_34 : f32
      %c0_35 = arith.constant 0 : index
      %c0_36 = arith.constant 0 : index
      %60 = vector.load %arg13[%c0_35, %c0_36] : memref<8x1xf32, #tpu.memory_space<vmem>>, vector<8x1xf32>
      %c0_37 = arith.constant 0 : index
      %c0_38 = arith.constant 0 : index
      %61 = vector.load %arg14[%c0_37, %c0_38] : memref<8x1xf32, #tpu.memory_space<vmem>>, vector<8x1xf32>
      %62 = math.log %61 : vector<8x1xf32>
      %63 = arith.addf %60, %62 : vector<8x1xf32>
      %c0_39 = arith.constant 0 : index
      %c0_40 = arith.constant 0 : index
      %64 = vector.load %arg15[%c0_39, %c0_40] : memref<8x1xf32, #tpu.memory_space<vmem>>, vector<8x1xf32>
      %65 = arith.subf %63, %64 : vector<8x1xf32>
      %cst_41 = arith.constant 0.000000e+00 : f32
      %66 = vector.broadcast %cst_41 : f32 to vector<8x1xf32>
      %67 = arith.select %46, %65, %66 : vector<8x1xi1>, vector<8x1xf32>
      %68 = vector.shape_cast %67 : vector<8x1xf32> to vector<1x8x1xf32>
      %cst_42 = arith.constant dense<0.000000e+00> : vector<1xf32>
      %69 = vector.multi_reduction <add>, %68, %cst_42 [1, 2] : vector<1x8x1xf32> to vector<1xf32>
      %70 = vector.shape_cast %69 : vector<1xf32> to vector<1x1x1xf32>
      %71 = vector.extract %70[0, 0, 0] : f32 from vector<1x1x1xf32>
      %cst_43 = arith.constant 8.000000e+00 : f32
      %72 = arith.divf %71, %cst_43 : f32
      %c0_44 = arith.constant 0 : index
      %73 = memref.load %arg8[%c0_44] : memref<3xf32, #tpu.memory_space<smem>>
      memref.store %59, %arg8[%c0_44] : memref<3xf32, #tpu.memory_space<smem>>
      %c1 = arith.constant 1 : index
      %74 = memref.load %arg8[%c1] : memref<3xf32, #tpu.memory_space<smem>>
      memref.store %72, %arg8[%c1] : memref<3xf32, #tpu.memory_space<smem>>
      %cst_45 = arith.constant 3.000000e-02 : f32
      %75 = arith.mulf %cst_45, %59 : f32
      %76 = arith.addf %72, %75 : f32
      %c2 = arith.constant 2 : index
      %77 = memref.load %arg8[%c2] : memref<3xf32, #tpu.memory_space<smem>>
      memref.store %76, %arg8[%c2] : memref<3xf32, #tpu.memory_space<smem>>
    } else {
    }
    return
  }
  func.func @transform_0(%arg0: i32, %arg1: memref<8xi32, #tpu.memory_space<smem>>) -> (i32, i32) {
    %c0_i32 = arith.constant 0 : i32
    %c0_i32_0 = arith.constant 0 : i32
    %c0_i32_1 = arith.constant 0 : i32
    return %c0_i32, %c0_i32_0 : i32, i32
  }
  func.func @transform_1(%arg0: i32, %arg1: memref<8xi32, #tpu.memory_space<smem>>) -> (i32, i32) {
    %c0_i32 = arith.constant 0 : i32
    %c0_i32_0 = arith.constant 0 : i32
    %c0_i32_1 = arith.constant 0 : i32
    return %c0_i32, %c0_i32_0 : i32, i32
  }
  func.func @transform_2(%arg0: i32, %arg1: memref<8xi32, #tpu.memory_space<smem>>) -> (i32, i32) {
    %c0_i32 = arith.constant 0 : i32
    %c0_i32_0 = arith.constant 0 : i32
    return %c0_i32, %arg0 : i32, i32
  }
  func.func @transform_3(%arg0: i32, %arg1: memref<8xi32, #tpu.memory_space<smem>>) -> (i32, i32) {
    %c0_i32 = arith.constant 0 : i32
    %c0_i32_0 = arith.constant 0 : i32
    return %c0_i32, %arg0 : i32, i32
  }
  func.func @transform_5(%arg0: i32, %arg1: memref<8xi32, #tpu.memory_space<smem>>) -> (i32, i32) {
    %c0_i32 = arith.constant 0 : i32
    %c0_i32_0 = arith.constant 0 : i32
    return %c0_i32, %arg0 : i32, i32
  }
  func.func @transform_6(%arg0: i32, %arg1: memref<8xi32, #tpu.memory_space<smem>>) -> i32 {
    %c0_i32 = arith.constant 0 : i32
    %c0_i32_0 = arith.constant 0 : i32
    return %c0_i32 : i32
  }
}

</mosaic_0001>

<bundles_post_ra>
// kernel: tpu_custom_call.1
= control target key start
LH: loop header
LB: loop body
LE: loop exit
PB: predicated region body
PF: predicated region fallthrough
CT: control target
= control target key end

     0   :  { %s646_s0 = inlined_call_operand.vmem [shape: s32[8], index: 0, kind: input, shape index: {}]   ;;  %s647_s1 = inlined_call_operand.vmem [shape: f32[8,128], index: 1, kind: input, shape index: {}]   ;;  %s648_s2 = inlined_call_operand.vmem [shape: s32[8,1], index: 2, kind: input, shape index: {}]   ;;  %s649_s3 = inlined_call_operand.hbm [shape: bf16[128,128], index: 3, kind: input, shape index: {}]   ;;  %s650_s4 = inlined_call_operand.vmem [shape: f32[1,128], index: 4, kind: input, shape index: {}]   ;;  %s651_s5 = inlined_call_operand.vmem [shape: f32[16,128], index: 5, kind: input, shape index: {}]   ;;  %s652_s6 = inlined_call_operand.hbm [shape: bf16[8,128], index: 6, kind: output, shape index: {0}]   ;;  %s653_s7 = inlined_call_operand.hbm [shape: f32[3], index: 7, kind: output, shape index: {1}]  }
   0x1   :  { %s13_s26 = sshll.u32 %s646_s0, 4  ;;  %s14_s26 = int_to_ptr.vmem [resolvable:$true] %s13_s26 }
   0x2   :  { %s454_s27 = scalar_lea.vmem %s14_s26, 16  ;;  %p459_p1 = scmp.lt.s32.totalorder %s14_s26, %s14_s26 }
   0x3   :  { %p455_p0 = scmp.ne.s32.totalorder %s14_s26, %s454_s27  ;;  %p460_p2 = scmp.lt.s32.totalorder %s454_s27, %s454_s27 }
   0x5   :  { %p461_p3 = por %p460_p2, %p459_p1 }
   0x7   :  { %p462_p4 = pnand %p461_p3, %p455_p0 }
   0x9   :  { %465 = shalt.err (!%p462_p4)  }
   0xa   :  { %s538_s28 = smov [#allocation10]  }
   0xb   :  { %16 = dma.vmem_to_smem %s14_s26, 16, %s538_s28, [#allocation9] }
   0xc   :  { %524 = dma.done.wait [#allocation9], 16 }
   0xd   :  { %525 = vsyncadd [#allocation9], 4294967280 }
   0xe   :  { %18 = sfence }
   0xf   :  { %19 = vsyncpa [#allocation12], 0 }
  0x10   :  { %20 = vsyncpa [#allocation13], 0 }
  0x11   :  { %21 = vsyncpa [#allocation14], 0  ;;  %s539_s29 = smov [#allocation11]   ;;  %s466_s9 = scalar_lea.hbm %s649_s3, 1024 }
  0x12   :  { %s31_s30 = sshll.u32 %s539_s29, 4  ;;  %p467_p5 = scmp.ne.s32.totalorder %s649_s3, %s466_s9  ;;  %s32_s30 = int_to_ptr.vmem [resolvable:$true] %s31_s30 }
  0x13   :  { %p470_p6 = scmp.lt.u32.totalorder %s466_s9, %s649_s3 }
  0x15   :  { %p472_p7 = pnand %p470_p6, %p467_p5 }
  0x17   :  { %475 = shalt.err (!%p472_p7)
}
  0x18   :  { %s476_s14 = scalar_lea.vmem %s32_s30, 1024  ;;  %p481_p9 = scmp.lt.s32.totalorder %s32_s30, %s32_s30 }
  0x19   :  { %p477_p8 = scmp.ne.s32.totalorder %s32_s30, %s476_s14  ;;  %p482_p10 = scmp.lt.s32.totalorder %s476_s14, %s476_s14 }
  0x1b   :  { %p483_p11 = por %p482_p10, %p481_p9 }
  0x1d   :  { %p484_p12 = pnand %p483_p11, %p477_p8 }
  0x1f   :  { %487 = shalt.err (!%p484_p12)
}
  0x20   :  { %s540_s15 = smov 64   ;;  %s541_s16 = smov 4  }
  0x21   :  { %37 = dma.hbm_to_vmem [thread:$0]  %s649_s3, 1024, %s32_s30, [#allocation12], %s540_s15, %s540_s15, %s541_s16  }
  0x22   :  { %526 = dma.done.wait [#allocation12], 1024  }
  0x23   :  { %527 = vsyncadd [#allocation12], 4294966272  ;;  %vm48_vm0 = vcmask 7168   ;;  %v542_v0 = vmov -1e+30   ;;  %v543_v1 = vmov 0.0  }
  0x24   :  { %49 = vst.msk [vmem:[#allocation6] sm:$0xff] %vm48_vm0, %v542_v0  ;;  %50 = vst.msk [vmem:[#allocation7] sm:$0xff] %vm48_vm0, %v543_v1  ;;  %v52_v2 = vld [vmem:[%s647_s1] sm:$0xff]  ;;  %s534_s3 = smov 0  }
  0x25   :  { %51 = vst.msk [vmem:[#allocation8] sm:$0xff] %vm48_vm0, %v543_v1  ;;  %v53_v3 = vpack.c.bf16 %v52_v2, %v52_v2  ;;  %v55_v4 = vmul.f32 %v52_v2, %v52_v2 }
  0x27   :  { %54 = vst [vmem:[#allocation2] sm:$0xf] %v53_v3  ;;  %56 = vadd.xlane.f32.xlu0 %v55_v4 }
  0xb4   :  { %v57_v5 = vpop.xlane.xlu0 %56 }
  0xb5   :  { %436 = vrsqrt.f32 %v57_v5 }
  0xbf   :  { %v437_v6 = vpop.eup %436 }
  0xc0   :  { %v59_v7 = vmul.f32 %v437_v6, %v52_v2 }
  0xc2   :  { %60 = vst [vmem:[#allocation3] sm:$0xff] %v59_v7 }
  0xc3 LB: > { %s67_s21 = sld [smem:[#allocation10 + %s536_s3]]  ;;  %s69_s1 = scalar_lea.vmem [#allocation4], %s536_s3  ;;  %s536_s3 = sphi %s534_s3, %s66_s3  }
  0xc9   : > { %s68_s24 = scalar_lea.vmem %s651_s5, %s67_s21 }
  0xca   : > { %v87_v8 = vld [vmem:[%s68_s24] sm:$0x1] }
  0xcb   : > { %88 = vst [vmem:[%s69_s1] sm:$0x1] %v87_v8 }
  0xcc   : > { %113 = vsyncadd [#allocation5], 16  ;;  %s66_s3 = sadd.s32 1, %s536_s3  }
  0xcd   : > { %p63_p13 = scmp.ge.s32.totalorder %s66_s3, 8  }
  0xce   :  { %394 = vmatprep.subr.bf16.mxu0 (%p63_p13), %v543_v1  ;;  %v440_v9 = vld [vmem:[#allocation11] sm:$0xff] (%p63_p13)   ;;  %vm544_vm1 = vmmov (%p63_p13), 0   ;;  %v441_v10 = vld [vmem:[#allocation11 + $0x8] sm:$0xff] (%p63_p13)   ;;  %v545_v11 = vmov (%p63_p13), 0   ;;  %v442_v12 = vld [vmem:[#allocation11 + $0x10] sm:$0xff] (%p63_p13)   ;;  %v252_v34 = vlaneseq (%p63_p13) }
  0xcf   :  { %65 = sbr.rel (!%p63_p13) target bundleno = 195 (0xc3), region = 108  ;;  %410 = vmatprep.mubr.msk.bf16.mxu0 (%p63_p13), %vm544_vm1, %v543_v1  ;;  %395 = vmatpush3.bf16.msra.mxu0 (%p63_p13), %v440_v9  ;;  %v256_v13 = vld [vmem:[%s648_s2] sm:$0xff] (%p63_p13)  ;;  %v444_v15 = vld [vmem:[#allocation11 + $0x20] sm:$0xff] (%p63_p13)   ;;  %v445_v16 = vld [vmem:[#allocation11 + $0x28] sm:$0xff] (%p63_p13)  }
  0xd0   :  { %439 = vset.pattern.permute.xlu1 (%p63_p13), %v545_v11  ;;  %396 = vmatprep.subr.bf16.mxu0 (%p63_p13), %v543_v1  ;;  %v443_v14 = vld [vmem:[#allocation11 + $0x18] sm:$0xff] (%p63_p13)   ;;  %v446_v17 = vld [vmem:[#allocation11 + $0x30] sm:$0xff] (%p63_p13)   ;;  %v228_v27 = vld [vmem:[#allocation6] sm:$0xff] (%p63_p13)  ;;  %v253_v35 = vand.u32 (%p63_p13), 127, %v252_v34 }
  0xd1   :  { %438 = vset.pattern.permute.xlu0 (%p63_p13), %v545_v11  ;;  %258 = vperm.xlu1 (%p63_p13), %439, %v256_v13   ;;  %v447_v18 = vld [vmem:[#allocation11 + $0x38] sm:$0xff] (%p63_p13)   ;;  %v114_v19 = vld [vmem:[#allocation2] sm:$0xf] (%p63_p13) }
  0xd2   :  { %v375_v20 = vld [vmem:[%s650_s4] ss:$0 sm:$0xff] (%p63_p13)  ;;  %v261_v45 = vld [vmem:[#allocation8] sm:$0xff] (%p63_p13) }
  0xd3   :  { %397 = vmatpush3.bf16.msra.mxu0 (%p63_p13), %v441_v10  ;;  %v243_v41 = vld [vmem:[#allocation7] sm:$0xff] (%p63_p13) }
  0xd4   :  { %398 = vmatprep.subr.bf16.mxu0 (%p63_p13), %v543_v1 }
  0xd7   :  { %399 = vmatpush3.bf16.msra.mxu0 %v442_v12 }
  0xd8   :  { %400 = vmatprep.subr.bf16.mxu0 %v543_v1 }
  0xdb   :  { %401 = vmatpush3.bf16.msra.mxu0 %v443_v14 }
  0xdc   :  { %402 = vmatprep.subr.bf16.mxu0 %v543_v1 }
  0xdf   :  { %403 = vmatpush3.bf16.msra.mxu0 %v444_v15 }
  0xe0   :  { %404 = vmatprep.subr.bf16.mxu0 %v543_v1 }
  0xe3   :  { %405 = vmatpush3.bf16.msra.mxu0 %v445_v16 }
  0xe4   :  { %406 = vmatprep.subr.bf16.mxu0 %v543_v1 }
  0xe7   :  { %407 = vmatpush3.bf16.msra.mxu0 %v446_v17 }
  0xe8   :  { %408 = vmatprep.subr.bf16.mxu0 %v543_v1 }
  0xeb   :  { %409 = vmatpush3.bf16.msra.mxu0 %v447_v18 }
  0xee   :  { %411 = vmatmul.mubr.bf16.vlgmr.msra.gmra.mrb[0].mxu0 %v114_v19 }
 0x150   :  { %v259_v36 = vpop.permute.xlu1 %258 }
 0x151   :  { %vm260_vm2 = vcmp.eq.s32.totalorder %v253_v35, %v259_v36 }
 0x1c1   :  { %v220_v21 = vpop.f32.mrb[0].mxu0 }
 0x1c2   :  { %v221_v22 = vadd.f32 %v375_v20, %v220_v21  ;;  %v412_v23 = vpop.f32.mrb[1].mxu0 }
 0x1c3   :  { %v223_v24 = vpop.f32.mrb[2].mxu0 }
 0x1c4   :  { %v226_v25 = vpack.c.bf16 %v221_v22, %v221_v22  ;;  %229 = vmax.xlane.f32.xlu0 %v221_v22  ;;  %v413_v26 = vpop.f32.mrb[3].mxu0  ;;  %v262_v38 = vsel %vm260_vm2, %v221_v22, 0.0 }
 0x1c6   :  { %227 = vst [vmem:[#allocation15] sm:$0xf] %v226_v25 }
 0x251   :  { %v230_v28 = vpop.xlane.xlu0 %229 }
 0x252   :  { %v231_v29 = vmax.f32 %v228_v27, %v230_v28 }
 0x254   :  { %v240_v30 = vsub.f32 %v228_v27, %v231_v29  ;;  %250 = vst.msk [vmem:[#allocation6] sm:$0xff] %vm48_vm0, %v231_v29  ;;  %234 = vperm.xlu0 %438, %v231_v29  }
 0x256   :  { %v241_v39 = vmul.f32 1.442695, %v240_v30 }
 0x2d3   :  { %v235_v31 = vpop.permute.xlu0 %234 }
 0x2d4   :  { %v237_v32 = vsub.f32 %v221_v22, %v235_v31 }
 0x2d6   :  { %v238_v33 = vmul.f32 1.442695, %v237_v32 }
 0x2d8   :  { %448 = vpow2.f32 %v238_v33 }
 0x2d9   :  { %450 = vpow2.f32 %v241_v39 }
 0x2e2   :  { %v449_v37 = vpop.eup %448 }
 0x2e3   :  { %245 = vadd.xlane.f32.xlu1 %v449_v37  ;;  %v451_v40 = vpop.eup %450 }
 0x2e4   :  { %v244_v42 = vmul.f32 %v451_v40, %v243_v41 }
 0x2e7   :  { %263 = vadd.xlane.f32.xlu1 %v262_v38 }
 0x370   :  { %v246_v43 = vpop.xlane.xlu1 %245 }
 0x371   :  { %v247_v44 = vadd.f32 %v246_v43, %v244_v42 }
 0x373   :  { %249 = vst.msk [vmem:[#allocation7] sm:$0xff] %vm48_vm0, %v247_v44 }
 0x374   :  { %v264_v46 = vpop.xlane.xlu1 %263 }
 0x375   :  { %v265_v47 = vadd.f32 %v264_v46, %v261_v45 }
 0x377   :  { %266 = vst.msk [vmem:[#allocation8] sm:$0xff] %vm48_vm0, %v265_v47 }
 0x378   :  { %528 = dma.done.wait [#allocation5], 128 }
 0x379   :  { %529 = vsyncadd [#allocation5], 4294967168  ;;  %v276_v48 = vld [vmem:[#allocation3] sm:$0xff]  ;;  %v277_v49 = vld [vmem:[#allocation4] sm:$0xff]  ;;  %s546_s4 = smov [#allocation15]  }
 0x37a   :  { %v278_v50 = vsub.f32 %v276_v48, %v277_v49  ;;  %v296_v51 = vld [vmem:[#allocation7] sm:$0xff]  ;;  %v295_v54 = vld [vmem:[#allocation6] sm:$0xff]  ;;  %s330_s27 = sshll.u32 %s546_s4, 4  ;;  %s331_s27 = int_to_ptr.vmem [resolvable:$true] %s330_s27 }
 0x37b   :  { %452 = vlog2.f32 %v296_v51  ;;  %s488_s28 = scalar_lea.vmem %s331_s27, 64  ;;  %p493_p1 = scmp.lt.s32.totalorder %s331_s27, %s331_s27 }
 0x37c   :  { %v282_v52 = vmul.f32 %v278_v50, %v278_v50  ;;  %p489_p0 = scmp.ne.s32.totalorder %s331_s27, %s488_s28  ;;  %p494_p2 = scmp.lt.s32.totalorder %s488_s28, %s488_s28 }
 0x37e   :  { %283 = vadd.xlane.f32.xlu0 %v282_v52  ;;  %v300_v56 = vld [vmem:[#allocation8] sm:$0xff]  ;;  %p495_p3 = por %p494_p2, %p493_p1 }
 0x380   :  { %p496_p4 = pnand %p495_p3, %p489_p0 }
 0x385   :  { %v453_v53 = vpop.eup %452 }
 0x386   :  { %v298_v55 = vmul.f32 0.6931472, %v453_v53 }
 0x388   :  { %v299_v57 = vadd.f32 %v298_v55, %v295_v54 }
 0x38a   :  { %v301_v58 = vsub.f32 %v299_v57, %v300_v56 }
 0x38c   :  { %v303_v59 = vsel %vm48_vm0, %v301_v58, 0.0 }
 0x38d   :  { %304 = vadd.xlane.f32.xlu0 %v303_v59 }
 0x38e   :  { %499 = shalt.err (!%p496_p4)
}
 0x38f   :  { %s500_s0 = scalar_lea.hbm %s652_s6, 64 }
 0x390   :  { %p501_p5 = scmp.ne.s32.totalorder %s652_s6, %s500_s0  ;;  %p504_p6 = scmp.lt.u32.totalorder %s500_s0, %s652_s6 }
 0x392   :  { %p506_p7 = pnand %p504_p6, %p501_p5 }
 0x394   :  { %509 = shalt.err (!%p506_p7)
}
 0x395   :  { %333 = dma.vmem_to_hbm [thread:$0]  %s331_s27, 64, %s652_s6, [#allocation13]  }
 0x396   :  { %s510_s3 = scalar_lea.hbm %s653_s7, 16 }
 0x397   :  { %p511_p8 = scmp.ne.s32.totalorder %s653_s7, %s510_s3  ;;  %p514_p9 = scmp.lt.u32.totalorder %s510_s3, %s653_s7 }
 0x399   :  { %p516_p10 = pnand %p514_p9, %p511_p8 }
 0x40b   :  { %v284_v60 = vpop.xlane.xlu0 %283 }
 0x40c   :  { %v285_v61 = vrot.slane %v284_v60, 4 }
 0x40e   :  { %v286_v62 = vadd.f32 %v285_v61, %v284_v60 }
 0x410   :  { %v287_v63 = vrot.slane %v286_v62, 2 }
 0x412   :  { %v288_v0 = vadd.f32 %v287_v63, %v286_v62 }
 0x414   :  { %v289_v1 = vrot.slane %v288_v0, 1 }
 0x416   :  { %v290_v2 = vadd.f32 %v289_v1, %v288_v0 }
 0x418   :  { %414 = vpush %v290_v2 }
 0x41a   :  { %v305_v3 = vpop.xlane.xlu0 %304 }
 0x41b   :  { %v306_v4 = vrot.slane %v305_v3, 4 }
 0x41d   :  { %v307_v5 = vadd.f32 %v306_v4, %v305_v3 }
 0x41f   :  { %v308_v6 = vrot.slane %v307_v5, 2 }
 0x421   :  { %v309_v7 = vadd.f32 %v308_v6, %v307_v5 }
 0x423   :  { %v310_v8 = vrot.slane %v309_v7, 1 }
 0x425   :  { %v311_v9 = vadd.f32 %v310_v8, %v309_v7 }
 0x427   :  { %416 = vpush %v311_v9 }
 0x449   :  { %s415_s14 = spop %414 }
 0x44a   :  { %s294_s15 = smul.f32 0.00390625, %s415_s14 }
 0x44c   :  { %317 = sst [smem:[#allocation16]] %s294_s15  ;;  %s320_s17 = smul.f32 0.03, %s294_s15 }
 0x458   :  { %s417_s6 = spop %416 }
 0x459   :  { %s315_s16 = smul.f32 0.125, %s417_s6 }
 0x45b   :  { %319 = sst [smem:[#allocation16 + $0x1]] %s315_s16 }
 0x45c   :  { %s321_s18 = sadd.f32 %s320_s17, %s315_s16 }
 0x45e   :  { %323 = sst [smem:[#allocation16 + $0x2]] %s321_s18 }
 0x45f   :  { %519 = shalt.err (!%p516_p10)
}
 0x460   :  { %s547_s1 = smov [#allocation16]  }
 0x461   :  { %341 = dma.smem_to_hbm %s547_s1, 16, %s653_s7, [#allocation14]  }
 0x462   :  { %530 = dma.done.wait [#allocation13], 64  }
 0x463   :  { %531 = vsyncadd [#allocation13], 4294967232 }
 0x464   :  { %532 = dma.done.wait [#allocation14], 16  }
 0x465   :  { %533 = vsyncadd [#allocation14], 4294967280 }
 0x466   :  { %348 = sfence }
 0x467   :  { %349 = vsyncpa [#allocation12], 1 }
 0x468   :  { %350 = vsyncpa [#allocation13], 1 }
 0x469   :  { %351 = vsyncpa [#allocation14], 1 }
 0x46a   :  { %352 = vsyncmov [#allocation5] }
 0x46d   :  { %s353_s2 = vpop.sfrf %352 }
 0x46e   :  { %p384_p11 = scmp.ne.s32.totalorder %s353_s2, 0 }
 0x470   :  { %357 = shalt.err (%p384_p11)  }

</bundles_post_ra>
